<compile_context>
chip_gen: v7x
topology: tpu7x:2x2x1
jax: 0.10.0
libtpu: 0.0.40
codegen_flags: <defaults>
</compile_context>

<pallas_src>
import functools

import jax
import jax.numpy as jnp
import numpy as np
from jax.experimental import pallas as pl
from jax.experimental.pallas import tpu as pltpu


def _lstm_recurrence_kernel(xg_ref, whh_ref, h_out_ref, h_sc, c_sc, *,
                            hidden, t_chunk):
    """Serial LSTM recurrence over one chunk of time steps.

    xg_ref   : (T_CHUNK, B_BLK, 4H)  precomputed x @ W_ih^T + (b_ih + b_hh)
    whh_ref  : (H, 4H)               transposed weight_hh_l0 (VMEM resident)
    h_out_ref: (T_CHUNK, B_BLK, H)   hidden state h_t for every step in chunk
    h_sc,c_sc: (B_BLK, H) f32        recurrent state, persists across chunks
    """
    tc = pl.program_id(1)  # time-chunk axis: serial ("arbitrary")

    @pl.when(tc == 0)
    def _():
        h_sc[...] = jnp.zeros_like(h_sc)
        c_sc[...] = jnp.zeros_like(c_sc)

    # Constant across the whole time sweep; loaded once per grid step.
    # (For large production H on v6e/v7x one would cast whh / x_gates to bf16
    #  here while keeping the f32 accumulator; left in f32 for bit-exact parity
    #  with the f32 reference in this test.)
    whh = whh_ref[...]

    def step(tt, carry):
        h, c = carry
        # MXU: (B_BLK, H) @ (H, 4H); EUP handles sigmoid/tanh (free slot).
        gates = xg_ref[tt] + jnp.dot(h, whh,
                                     preferred_element_type=jnp.float32)
        # PyTorch LSTM gate order along 4H: i, f, g, o (static, contiguous
        # slices; lane-aligned whenever H is a multiple of 128).
        i = jax.nn.sigmoid(gates[:, 0 * hidden:1 * hidden])
        f = jax.nn.sigmoid(gates[:, 1 * hidden:2 * hidden])
        g = jnp.tanh(gates[:, 2 * hidden:3 * hidden])
        o = jax.nn.sigmoid(gates[:, 3 * hidden:4 * hidden])
        c_new = f * c + i * g
        h_new = o * jnp.tanh(c_new)
        h_out_ref[tt] = h_new.astype(h_out_ref.dtype)
        return h_new, c_new

    h, c = jax.lax.fori_loop(0, t_chunk, step, (h_sc[...], c_sc[...]),
                             unroll=True)
    h_sc[...] = h
    c_sc[...] = c


def rnn_layers_forward(data, non_pad_mask, params, *, t_chunk=None, b_blk=None):
    """Pallas implementation of RNN_layers.forward.

    data:         (B, T, d_model) float32
    non_pad_mask: (B, T, 1)       float32 (1 valid, 0 pad; trailing padding)
    returns:      (B, T, d_model) float32
    """
    B, T, D = data.shape
    H = params["w_hh"].shape[1]
    G = 4 * H

    wih_t = params["w_ih"].T                                   # (D, 4H)
    whh_t = params["w_hh"].T                                    # (H, 4H)
    bias = (params["b_ih"] + params["b_hh"])[None, None, :]     # (1, 1, 4H)
    wp_t = params["w_proj"].T                                   # (H, D)
    bp = params["b_proj"][None, None, :]                        # (1, 1, D)

    # ---- Phase 1: hoisted input matmul (one big parallel matmul, time-major).
    x_gates = jnp.einsum("btd,dg->tbg", data.astype(jnp.float32), wih_t) + bias

    # ---- Chunk the time axis; pad (trailing, causal => harmless) if needed.
    if t_chunk is None:
        t_chunk = T if T <= 32 else 32
    t_pad = pl.cdiv(T, t_chunk) * t_chunk
    if t_pad != T:
        x_gates = jnp.pad(x_gates, ((0, t_pad - T), (0, 0), (0, 0)))

    # Batch block: splitting across TCs (v7x megacore) only pays for large B;
    # b_blk must equal B or be a multiple of 8 (sublane constraint).
    if b_blk is None:
        b_blk = B
    assert B % b_blk == 0, "b_blk must divide B"

    grid = (B // b_blk, t_pad // t_chunk)

    # Advisory cost for the XLA scheduler: serial recurrence FLOPs + EUP work.
    cost = pl.CostEstimate(
        flops=2 * t_pad * B * H * G,
        transcendentals=5 * t_pad * B * H,
        bytes_accessed=4 * (t_pad * B * G + H * G + t_pad * B * H),
    )

    kernel = functools.partial(_lstm_recurrence_kernel,
                               hidden=H, t_chunk=t_chunk)
    h_all = pl.pallas_call(
        kernel,
        out_shape=jax.ShapeDtypeStruct((t_pad, B, H), jnp.float32),
        grid_spec=pltpu.PrefetchScalarGridSpec(
            num_scalar_prefetch=0,
            grid=grid,                       # (batch blocks, time chunks)
            in_specs=[
                pl.BlockSpec((t_chunk, b_blk, G), lambda bb, tc: (tc, bb, 0)),
                pl.BlockSpec((H, G), lambda bb, tc: (0, 0)),   # W_hh^T resident
            ],
            out_specs=pl.BlockSpec((t_chunk, b_blk, H),
                                   lambda bb, tc: (tc, bb, 0)),
            scratch_shapes=[pltpu.VMEM((b_blk, H), jnp.float32),   # h
                            pltpu.VMEM((b_blk, H), jnp.float32)],  # c
        ),
        compiler_params=pltpu.CompilerParams(
            # batch axis parallel (2 TCs on v7x); time axis MUST stay arbitrary
            # because h/c scratch carries across time chunks.
            dimension_semantics=("parallel", "arbitrary")),
        cost_estimate=cost,
    )(x_gates, whh_t)

    h_all = h_all[:T]                                       # (T, B, H)

    # ---- Phase 3: pack/pad equivalence (zero padded h) + hoisted projection.
    m_tb1 = jnp.transpose(non_pad_mask, (1, 0, 2)).astype(jnp.float32)
    out = jnp.einsum("tbh,hd->btd", h_all * m_tb1, wp_t) + bp
    return out.astype(data.dtype)


def rnn_layers_ref(data, non_pad_mask, params):
    """Pure-JAX reference (lax.scan) mirroring PyTorch pack/LSTM/pad/Linear."""
    B, T, D = data.shape
    H = params["w_hh"].shape[1]
    wih_t = params["w_ih"].T
    whh_t = params["w_hh"].T
    b = params["b_ih"] + params["b_hh"]

    def step(carry, xs):
        h, c = carry
        x, m = xs
        gates = x @ wih_t + h @ whh_t + b
        i = jax.nn.sigmoid(gates[:, :H])
        f = jax.nn.sigmoid(gates[:, H:2 * H])
        g = jnp.tanh(gates[:, 2 * H:3 * H])
        o = jax.nn.sigmoid(gates[:, 3 * H:])
        c = f * c + i * g
        h = o * jnp.tanh(c)
        return (h, c), h * m

    x_t = jnp.transpose(data, (1, 0, 2))
    m_t = jnp.transpose(non_pad_mask, (1, 0, 2))
    h0 = jnp.zeros((B, H), jnp.float32)
    c0 = jnp.zeros((B, H), jnp.float32)
    _, hs = jax.lax.scan(step, (h0, c0), (x_t, m_t))
    hs = jnp.transpose(hs, (1, 0, 2))
    return hs @ params["w_proj"].T + params["b_proj"]


def init_params(key, d_model, d_rnn):
    """Deterministic synthetic params with PyTorch-style uniform ranges."""
    ks = jax.random.split(key, 6)
    k_lstm = 1.0 / np.sqrt(d_rnn)
    k_lin = 1.0 / np.sqrt(d_rnn)
    u = lambda k, shape, bound: jax.random.uniform(
        k, shape, jnp.float32, -bound, bound)
    return {
        "w_ih": u(ks[0], (4 * d_rnn, d_model), k_lstm),
        "w_hh": u(ks[1], (4 * d_rnn, d_rnn), k_lstm),
        "b_ih": u(ks[2], (4 * d_rnn,), k_lstm),
        "b_hh": u(ks[3], (4 * d_rnn,), k_lstm),
        "w_proj": u(ks[4], (d_model, d_rnn), k_lin),
        "b_proj": u(ks[5], (d_model,), k_lin),
    }


if __name__ == "__main__":
    B, T, d_model, d_rnn = 2, 8, 32, 32

    key = jax.random.PRNGKey(0)
    k_data, k_params = jax.random.split(key)
    data = jax.random.normal(k_data, (B, T, d_model), jnp.float32)

    # Trailing padding; max length == T so pad_packed output time dim == T.
    lengths = np.array([T, 5], dtype=np.int32)
    t_idx = np.arange(T)[None, :]
    non_pad_mask = (t_idx < lengths[:, None]).astype(np.float32)[:, :, None]
    non_pad_mask = jnp.asarray(non_pad_mask)               # (B, T, 1)

    params = init_params(k_params, d_model, d_rnn)

    out = jax.block_until_ready(rnn_layers_forward(data, non_pad_mask, params))
    ref = jax.block_until_ready(rnn_layers_ref(data, non_pad_mask, params))

    np.testing.assert_allclose(np.asarray(out), np.asarray(ref),
                               rtol=1e-5, atol=1e-5)
    print("KERNEL_OK")
</pallas_src>

<mosaic_0001>
module attributes {stable_mosaic.version = 11 : i64} {
  func.func @_lstm_recurrence_kernel(%arg0: i32, %arg1: i32, %arg2: memref<8x2x128xf32, #tpu.memory_space<vmem>>, %arg3: memref<32x128xf32, #tpu.memory_space<vmem>>, %arg4: memref<8x2x32xf32, #tpu.memory_space<vmem>>, %arg5: memref<2x32xf32, #tpu.memory_space<vmem>>, %arg6: memref<2x32xf32, #tpu.memory_space<vmem>>) attributes {dimension_semantics = [#tpu.dimension_semantics<parallel>, #tpu.dimension_semantics<arbitrary>], iteration_bounds = array<i64: 1, 1>, scalar_prefetch = 0 : i64, scratch_operands = 2 : i64, tpu.core_type = #tpu.core_type<tc>, window_params = [{transform_indices = @transform_0, window_bounds = array<i64: 8, 2, 128>}, {pipeline_mode = #tpu.pipeline_mode<synchronous>, transform_indices = @transform_1, window_bounds = array<i64: 32, 128>}, {transform_indices = @transform_2, window_bounds = array<i64: 8, 2, 32>}]} {
    %c0_i32 = arith.constant 0 : i32
    %0 = arith.cmpi eq, %arg1, %c0_i32 : i32
    %1 = arith.extui %0 : i1 to i32
    %c0_i32_0 = arith.constant 0 : i32
    %2 = arith.cmpi ne, %1, %c0_i32_0 : i32
    scf.if %2 {
      %cst_74 = arith.constant 0.000000e+00 : f32
      %280 = vector.broadcast %cst_74 : f32 to vector<2x32xf32>
      %c0_75 = arith.constant 0 : index
      %c0_76 = arith.constant 0 : index
      %281 = vector.load %arg5[%c0_75, %c0_76] : memref<2x32xf32, #tpu.memory_space<vmem>>, vector<2x32xf32>
      tpu.vector_store %arg5[%c0_75, %c0_76], %280 {strides = array<i32>} : memref<2x32xf32, #tpu.memory_space<vmem>>, vector<2x32xf32>,
      %cst_77 = arith.constant 0.000000e+00 : f32
      %282 = vector.broadcast %cst_77 : f32 to vector<2x32xf32>
      %c0_78 = arith.constant 0 : index
      %c0_79 = arith.constant 0 : index
      %283 = vector.load %arg6[%c0_78, %c0_79] : memref<2x32xf32, #tpu.memory_space<vmem>>, vector<2x32xf32>
      tpu.vector_store %arg6[%c0_78, %c0_79], %282 {strides = array<i32>} : memref<2x32xf32, #tpu.memory_space<vmem>>, vector<2x32xf32>,
    } else {
    }
    %c0 = arith.constant 0 : index
    %c0_1 = arith.constant 0 : index
    %3 = vector.load %arg3[%c0, %c0_1] : memref<32x128xf32, #tpu.memory_space<vmem>>, vector<32x128xf32>
    %c0_2 = arith.constant 0 : index
    %c0_3 = arith.constant 0 : index
    %4 = vector.load %arg5[%c0_2, %c0_3] : memref<2x32xf32, #tpu.memory_space<vmem>>, vector<2x32xf32>
    %c0_4 = arith.constant 0 : index
    %c0_5 = arith.constant 0 : index
    %5 = vector.load %arg6[%c0_4, %c0_5] : memref<2x32xf32, #tpu.memory_space<vmem>>, vector<2x32xf32>
    %c0_i32_6 = arith.constant 0 : i32
    %6 = arith.index_cast %c0_i32_6 : i32 to index
    %c0_7 = arith.constant 0 : index
    %c0_8 = arith.constant 0 : index
    %7 = vector.load %arg2[%6, %c0_7, %c0_8] : memref<8x2x128xf32, #tpu.memory_space<vmem>>, vector<1x2x128xf32>
    %8 = vector.shape_cast %7 : vector<1x2x128xf32> to vector<2x128xf32>
    %cst = arith.constant dense<0.000000e+00> : vector<2x128xf32>
    %9 = tpu.matmul %4, %3, %cst {dimension_numbers = #tpu.dot_dimension_numbers<[1], [0], [0], [1], [0, 0, 1, 1], [], []>} : vector<2x32xf32>, vector<32x128xf32>, vector<2x128xf32> -> vector<2x128xf32>
    %10 = arith.addf %8, %9 : vector<2x128xf32>
    %11 = vector.extract_strided_slice %10 {offsets = [0, 0], sizes = [2, 32], strides = [1, 1]} : vector<2x128xf32> to vector<2x32xf32>
    %12 = arith.negf %11 : vector<2x32xf32>
    %13 = math.exp %12 : vector<2x32xf32>
    %cst_9 = arith.constant 1.000000e+00 : f32
    %14 = vector.broadcast %cst_9 : f32 to vector<2x32xf32>
    %15 = arith.addf %14, %13 : vector<2x32xf32>
    %16 = arith.divf %14, %15 : vector<2x32xf32>
    %17 = vector.extract_strided_slice %10 {offsets = [0, 32], sizes = [2, 32], strides = [1, 1]} : vector<2x128xf32> to vector<2x32xf32>
    %18 = arith.negf %17 : vector<2x32xf32>
    %19 = math.exp %18 : vector<2x32xf32>
    %cst_10 = arith.constant 1.000000e+00 : f32
    %20 = vector.broadcast %cst_10 : f32 to vector<2x32xf32>
    %21 = arith.addf %20, %19 : vector<2x32xf32>
    %22 = arith.divf %20, %21 : vector<2x32xf32>
    %23 = vector.extract_strided_slice %10 {offsets = [0, 64], sizes = [2, 32], strides = [1, 1]} : vector<2x128xf32> to vector<2x32xf32>
    %24 = math.tanh %23 : vector<2x32xf32>
    %25 = vector.extract_strided_slice %10 {offsets = [0, 96], sizes = [2, 32], strides = [1, 1]} : vector<2x128xf32> to vector<2x32xf32>
    %26 = arith.negf %25 : vector<2x32xf32>
    %27 = math.exp %26 : vector<2x32xf32>
    %cst_11 = arith.constant 1.000000e+00 : f32
    %28 = vector.broadcast %cst_11 : f32 to vector<2x32xf32>
    %29 = arith.addf %28, %27 : vector<2x32xf32>
    %30 = arith.divf %28, %29 : vector<2x32xf32>
    %31 = arith.mulf %22, %5 : vector<2x32xf32>
    %32 = arith.mulf %16, %24 : vector<2x32xf32>
    %33 = arith.addf %31, %32 : vector<2x32xf32>
    %34 = math.tanh %33 : vector<2x32xf32>
    %35 = arith.mulf %30, %34 : vector<2x32xf32>
    %36 = arith.index_cast %c0_i32_6 : i32 to index
    %c0_12 = arith.constant 0 : index
    %c0_13 = arith.constant 0 : index
    %37 = vector.load %arg4[%36, %c0_12, %c0_13] : memref<8x2x32xf32, #tpu.memory_space<vmem>>, vector<1x2x32xf32>
    %38 = vector.shape_cast %37 : vector<1x2x32xf32> to vector<2x32xf32>
    %39 = vector.shape_cast %35 : vector<2x32xf32> to vector<1x2x32xf32>
    tpu.vector_store %arg4[%36, %c0_12, %c0_13], %39 {strides = array<i32>} : memref<8x2x32xf32, #tpu.memory_space<vmem>>, vector<1x2x32xf32>,
    %c1_i32 = arith.constant 1 : i32
    %40 = arith.index_cast %c1_i32 : i32 to index
    %c0_14 = arith.constant 0 : index
    %c0_15 = arith.constant 0 : index
    %41 = vector.load %arg2[%40, %c0_14, %c0_15] : memref<8x2x128xf32, #tpu.memory_space<vmem>>, vector<1x2x128xf32>
    %42 = vector.shape_cast %41 : vector<1x2x128xf32> to vector<2x128xf32>
    %cst_16 = arith.constant dense<0.000000e+00> : vector<2x128xf32>
    %43 = tpu.matmul %35, %3, %cst_16 {dimension_numbers = #tpu.dot_dimension_numbers<[1], [0], [0], [1], [0, 0, 1, 1], [], []>} : vector<2x32xf32>, vector<32x128xf32>, vector<2x128xf32> -> vector<2x128xf32>
    %44 = arith.addf %42, %43 : vector<2x128xf32>
    %45 = vector.extract_strided_slice %44 {offsets = [0, 0], sizes = [2, 32], strides = [1, 1]} : vector<2x128xf32> to vector<2x32xf32>
    %46 = arith.negf %45 : vector<2x32xf32>
    %47 = math.exp %46 : vector<2x32xf32>
    %cst_17 = arith.constant 1.000000e+00 : f32
    %48 = vector.broadcast %cst_17 : f32 to vector<2x32xf32>
    %49 = arith.addf %48, %47 : vector<2x32xf32>
    %50 = arith.divf %48, %49 : vector<2x32xf32>
    %51 = vector.extract_strided_slice %44 {offsets = [0, 32], sizes = [2, 32], strides = [1, 1]} : vector<2x128xf32> to vector<2x32xf32>
    %52 = arith.negf %51 : vector<2x32xf32>
    %53 = math.exp %52 : vector<2x32xf32>
    %cst_18 = arith.constant 1.000000e+00 : f32
    %54 = vector.broadcast %cst_18 : f32 to vector<2x32xf32>
    %55 = arith.addf %54, %53 : vector<2x32xf32>
    %56 = arith.divf %54, %55 : vector<2x32xf32>
    %57 = vector.extract_strided_slice %44 {offsets = [0, 64], sizes = [2, 32], strides = [1, 1]} : vector<2x128xf32> to vector<2x32xf32>
    %58 = math.tanh %57 : vector<2x32xf32>
    %59 = vector.extract_strided_slice %44 {offsets = [0, 96], sizes = [2, 32], strides = [1, 1]} : vector<2x128xf32> to vector<2x32xf32>
    %60 = arith.negf %59 : vector<2x32xf32>
    %61 = math.exp %60 : vector<2x32xf32>
    %cst_19 = arith.constant 1.000000e+00 : f32
    %62 = vector.broadcast %cst_19 : f32 to vector<2x32xf32>
    %63 = arith.addf %62, %61 : vector<2x32xf32>
    %64 = arith.divf %62, %63 : vector<2x32xf32>
    %65 = arith.mulf %56, %33 : vector<2x32xf32>
    %66 = arith.mulf %50, %58 : vector<2x32xf32>
    %67 = arith.addf %65, %66 : vector<2x32xf32>
    %68 = math.tanh %67 : vector<2x32xf32>
    %69 = arith.mulf %64, %68 : vector<2x32xf32>
    %70 = arith.index_cast %c1_i32 : i32 to index
    %c0_20 = arith.constant 0 : index
    %c0_21 = arith.constant 0 : index
    %71 = vector.load %arg4[%70, %c0_20, %c0_21] : memref<8x2x32xf32, #tpu.memory_space<vmem>>, vector<1x2x32xf32>
    %72 = vector.shape_cast %71 : vector<1x2x32xf32> to vector<2x32xf32>
    %73 = vector.shape_cast %69 : vector<2x32xf32> to vector<1x2x32xf32>
    tpu.vector_store %arg4[%70, %c0_20, %c0_21], %73 {strides = array<i32>} : memref<8x2x32xf32, #tpu.memory_space<vmem>>, vector<1x2x32xf32>,
    %c2_i32 = arith.constant 2 : i32
    %74 = arith.index_cast %c2_i32 : i32 to index
    %c0_22 = arith.constant 0 : index
    %c0_23 = arith.constant 0 : index
    %75 = vector.load %arg2[%74, %c0_22, %c0_23] : memref<8x2x128xf32, #tpu.memory_space<vmem>>, vector<1x2x128xf32>
    %76 = vector.shape_cast %75 : vector<1x2x128xf32> to vector<2x128xf32>
    %cst_24 = arith.constant dense<0.000000e+00> : vector<2x128xf32>
    %77 = tpu.matmul %69, %3, %cst_24 {dimension_numbers = #tpu.dot_dimension_numbers<[1], [0], [0], [1], [0, 0, 1, 1], [], []>} : vector<2x32xf32>, vector<32x128xf32>, vector<2x128xf32> -> vector<2x128xf32>
    %78 = arith.addf %76, %77 : vector<2x128xf32>
    %79 = vector.extract_strided_slice %78 {offsets = [0, 0], sizes = [2, 32], strides = [1, 1]} : vector<2x128xf32> to vector<2x32xf32>
    %80 = arith.negf %79 : vector<2x32xf32>
    %81 = math.exp %80 : vector<2x32xf32>
    %cst_25 = arith.constant 1.000000e+00 : f32
    %82 = vector.broadcast %cst_25 : f32 to vector<2x32xf32>
    %83 = arith.addf %82, %81 : vector<2x32xf32>
    %84 = arith.divf %82, %83 : vector<2x32xf32>
    %85 = vector.extract_strided_slice %78 {offsets = [0, 32], sizes = [2, 32], strides = [1, 1]} : vector<2x128xf32> to vector<2x32xf32>
    %86 = arith.negf %85 : vector<2x32xf32>
    %87 = math.exp %86 : vector<2x32xf32>
    %cst_26 = arith.constant 1.000000e+00 : f32
    %88 = vector.broadcast %cst_26 : f32 to vector<2x32xf32>
    %89 = arith.addf %88, %87 : vector<2x32xf32>
    %90 = arith.divf %88, %89 : vector<2x32xf32>
    %91 = vector.extract_strided_slice %78 {offsets = [0, 64], sizes = [2, 32], strides = [1, 1]} : vector<2x128xf32> to vector<2x32xf32>
    %92 = math.tanh %91 : vector<2x32xf32>
    %93 = vector.extract_strided_slice %78 {offsets = [0, 96], sizes = [2, 32], strides = [1, 1]} : vector<2x128xf32> to vector<2x32xf32>
    %94 = arith.negf %93 : vector<2x32xf32>
    %95 = math.exp %94 : vector<2x32xf32>
    %cst_27 = arith.constant 1.000000e+00 : f32
    %96 = vector.broadcast %cst_27 : f32 to vector<2x32xf32>
    %97 = arith.addf %96, %95 : vector<2x32xf32>
    %98 = arith.divf %96, %97 : vector<2x32xf32>
    %99 = arith.mulf %90, %67 : vector<2x32xf32>
    %100 = arith.mulf %84, %92 : vector<2x32xf32>
    %101 = arith.addf %99, %100 : vector<2x32xf32>
    %102 = math.tanh %101 : vector<2x32xf32>
    %103 = arith.mulf %98, %102 : vector<2x32xf32>
    %104 = arith.index_cast %c2_i32 : i32 to index
    %c0_28 = arith.constant 0 : index
    %c0_29 = arith.constant 0 : index
    %105 = vector.load %arg4[%104, %c0_28, %c0_29] : memref<8x2x32xf32, #tpu.memory_space<vmem>>, vector<1x2x32xf32>
    %106 = vector.shape_cast %105 : vector<1x2x32xf32> to vector<2x32xf32>
    %107 = vector.shape_cast %103 : vector<2x32xf32> to vector<1x2x32xf32>
    tpu.vector_store %arg4[%104, %c0_28, %c0_29], %107 {strides = array<i32>} : memref<8x2x32xf32, #tpu.memory_space<vmem>>, vector<1x2x32xf32>,
    %c3_i32 = arith.constant 3 : i32
    %108 = arith.index_cast %c3_i32 : i32 to index
    %c0_30 = arith.constant 0 : index
    %c0_31 = arith.constant 0 : index
    %109 = vector.load %arg2[%108, %c0_30, %c0_31] : memref<8x2x128xf32, #tpu.memory_space<vmem>>, vector<1x2x128xf32>
    %110 = vector.shape_cast %109 : vector<1x2x128xf32> to vector<2x128xf32>
    %cst_32 = arith.constant dense<0.000000e+00> : vector<2x128xf32>
    %111 = tpu.matmul %103, %3, %cst_32 {dimension_numbers = #tpu.dot_dimension_numbers<[1], [0], [0], [1], [0, 0, 1, 1], [], []>} : vector<2x32xf32>, vector<32x128xf32>, vector<2x128xf32> -> vector<2x128xf32>
    %112 = arith.addf %110, %111 : vector<2x128xf32>
    %113 = vector.extract_strided_slice %112 {offsets = [0, 0], sizes = [2, 32], strides = [1, 1]} : vector<2x128xf32> to vector<2x32xf32>
    %114 = arith.negf %113 : vector<2x32xf32>
    %115 = math.exp %114 : vector<2x32xf32>
    %cst_33 = arith.constant 1.000000e+00 : f32
    %116 = vector.broadcast %cst_33 : f32 to vector<2x32xf32>
    %117 = arith.addf %116, %115 : vector<2x32xf32>
    %118 = arith.divf %116, %117 : vector<2x32xf32>
    %119 = vector.extract_strided_slice %112 {offsets = [0, 32], sizes = [2, 32], strides = [1, 1]} : vector<2x128xf32> to vector<2x32xf32>
    %120 = arith.negf %119 : vector<2x32xf32>
    %121 = math.exp %120 : vector<2x32xf32>
    %cst_34 = arith.constant 1.000000e+00 : f32
    %122 = vector.broadcast %cst_34 : f32 to vector<2x32xf32>
    %123 = arith.addf %122, %121 : vector<2x32xf32>
    %124 = arith.divf %122, %123 : vector<2x32xf32>
    %125 = vector.extract_strided_slice %112 {offsets = [0, 64], sizes = [2, 32], strides = [1, 1]} : vector<2x128xf32> to vector<2x32xf32>
    %126 = math.tanh %125 : vector<2x32xf32>
    %127 = vector.extract_strided_slice %112 {offsets = [0, 96], sizes = [2, 32], strides = [1, 1]} : vector<2x128xf32> to vector<2x32xf32>
    %128 = arith.negf %127 : vector<2x32xf32>
    %129 = math.exp %128 : vector<2x32xf32>
    %cst_35 = arith.constant 1.000000e+00 : f32
    %130 = vector.broadcast %cst_35 : f32 to vector<2x32xf32>
    %131 = arith.addf %130, %129 : vector<2x32xf32>
    %132 = arith.divf %130, %131 : vector<2x32xf32>
    %133 = arith.mulf %124, %101 : vector<2x32xf32>
    %134 = arith.mulf %118, %126 : vector<2x32xf32>
    %135 = arith.addf %133, %134 : vector<2x32xf32>
    %136 = math.tanh %135 : vector<2x32xf32>
    %137 = arith.mulf %132, %136 : vector<2x32xf32>
    %138 = arith.index_cast %c3_i32 : i32 to index
    %c0_36 = arith.constant 0 : index
    %c0_37 = arith.constant 0 : index
    %139 = vector.load %arg4[%138, %c0_36, %c0_37] : memref<8x2x32xf32, #tpu.memory_space<vmem>>, vector<1x2x32xf32>
    %140 = vector.shape_cast %139 : vector<1x2x32xf32> to vector<2x32xf32>
    %141 = vector.shape_cast %137 : vector<2x32xf32> to vector<1x2x32xf32>
    tpu.vector_store %arg4[%138, %c0_36, %c0_37], %141 {strides = array<i32>} : memref<8x2x32xf32, #tpu.memory_space<vmem>>, vector<1x2x32xf32>,
    %c4_i32 = arith.constant 4 : i32
    %142 = arith.index_cast %c4_i32 : i32 to index
    %c0_38 = arith.constant 0 : index
    %c0_39 = arith.constant 0 : index
    %143 = vector.load %arg2[%142, %c0_38, %c0_39] : memref<8x2x128xf32, #tpu.memory_space<vmem>>, vector<1x2x128xf32>
    %144 = vector.shape_cast %143 : vector<1x2x128xf32> to vector<2x128xf32>
    %cst_40 = arith.constant dense<0.000000e+00> : vector<2x128xf32>
    %145 = tpu.matmul %137, %3, %cst_40 {dimension_numbers = #tpu.dot_dimension_numbers<[1], [0], [0], [1], [0, 0, 1, 1], [], []>} : vector<2x32xf32>, vector<32x128xf32>, vector<2x128xf32> -> vector<2x128xf32>
    %146 = arith.addf %144, %145 : vector<2x128xf32>
    %147 = vector.extract_strided_slice %146 {offsets = [0, 0], sizes = [2, 32], strides = [1, 1]} : vector<2x128xf32> to vector<2x32xf32>
    %148 = arith.negf %147 : vector<2x32xf32>
    %149 = math.exp %148 : vector<2x32xf32>
    %cst_41 = arith.constant 1.000000e+00 : f32
    %150 = vector.broadcast %cst_41 : f32 to vector<2x32xf32>
    %151 = arith.addf %150, %149 : vector<2x32xf32>
    %152 = arith.divf %150, %151 : vector<2x32xf32>
    %153 = vector.extract_strided_slice %146 {offsets = [0, 32], sizes = [2, 32], strides = [1, 1]} : vector<2x128xf32> to vector<2x32xf32>
    %154 = arith.negf %153 : vector<2x32xf32>
    %155 = math.exp %154 : vector<2x32xf32>
    %cst_42 = arith.constant 1.000000e+00 : f32
    %156 = vector.broadcast %cst_42 : f32 to vector<2x32xf32>
    %157 = arith.addf %156, %155 : vector<2x32xf32>
    %158 = arith.divf %156, %157 : vector<2x32xf32>
    %159 = vector.extract_strided_slice %146 {offsets = [0, 64], sizes = [2, 32], strides = [1, 1]} : vector<2x128xf32> to vector<2x32xf32>
    %160 = math.tanh %159 : vector<2x32xf32>
    %161 = vector.extract_strided_slice %146 {offsets = [0, 96], sizes = [2, 32], strides = [1, 1]} : vector<2x128xf32> to vector<2x32xf32>
    %162 = arith.negf %161 : vector<2x32xf32>
    %163 = math.exp %162 : vector<2x32xf32>
    %cst_43 = arith.constant 1.000000e+00 : f32
    %164 = vector.broadcast %cst_43 : f32 to vector<2x32xf32>
    %165 = arith.addf %164, %163 : vector<2x32xf32>
    %166 = arith.divf %164, %165 : vector<2x32xf32>
    %167 = arith.mulf %158, %135 : vector<2x32xf32>
    %168 = arith.mulf %152, %160 : vector<2x32xf32>
    %169 = arith.addf %167, %168 : vector<2x32xf32>
    %170 = math.tanh %169 : vector<2x32xf32>
    %171 = arith.mulf %166, %170 : vector<2x32xf32>
    %172 = arith.index_cast %c4_i32 : i32 to index
    %c0_44 = arith.constant 0 : index
    %c0_45 = arith.constant 0 : index
    %173 = vector.load %arg4[%172, %c0_44, %c0_45] : memref<8x2x32xf32, #tpu.memory_space<vmem>>, vector<1x2x32xf32>
    %174 = vector.shape_cast %173 : vector<1x2x32xf32> to vector<2x32xf32>
    %175 = vector.shape_cast %171 : vector<2x32xf32> to vector<1x2x32xf32>
    tpu.vector_store %arg4[%172, %c0_44, %c0_45], %175 {strides = array<i32>} : memref<8x2x32xf32, #tpu.memory_space<vmem>>, vector<1x2x32xf32>,
    %c5_i32 = arith.constant 5 : i32
    %176 = arith.index_cast %c5_i32 : i32 to index
    %c0_46 = arith.constant 0 : index
    %c0_47 = arith.constant 0 : index
    %177 = vector.load %arg2[%176, %c0_46, %c0_47] : memref<8x2x128xf32, #tpu.memory_space<vmem>>, vector<1x2x128xf32>
    %178 = vector.shape_cast %177 : vector<1x2x128xf32> to vector<2x128xf32>
    %cst_48 = arith.constant dense<0.000000e+00> : vector<2x128xf32>
    %179 = tpu.matmul %171, %3, %cst_48 {dimension_numbers = #tpu.dot_dimension_numbers<[1], [0], [0], [1], [0, 0, 1, 1], [], []>} : vector<2x32xf32>, vector<32x128xf32>, vector<2x128xf32> -> vector<2x128xf32>
    %180 = arith.addf %178, %179 : vector<2x128xf32>
    %181 = vector.extract_strided_slice %180 {offsets = [0, 0], sizes = [2, 32], strides = [1, 1]} : vector<2x128xf32> to vector<2x32xf32>
    %182 = arith.negf %181 : vector<2x32xf32>
    %183 = math.exp %182 : vector<2x32xf32>
    %cst_49 = arith.constant 1.000000e+00 : f32
    %184 = vector.broadcast %cst_49 : f32 to vector<2x32xf32>
    %185 = arith.addf %184, %183 : vector<2x32xf32>
    %186 = arith.divf %184, %185 : vector<2x32xf32>
    %187 = vector.extract_strided_slice %180 {offsets = [0, 32], sizes = [2, 32], strides = [1, 1]} : vector<2x128xf32> to vector<2x32xf32>
    %188 = arith.negf %187 : vector<2x32xf32>
    %189 = math.exp %188 : vector<2x32xf32>
    %cst_50 = arith.constant 1.000000e+00 : f32
    %190 = vector.broadcast %cst_50 : f32 to vector<2x32xf32>
    %191 = arith.addf %190, %189 : vector<2x32xf32>
    %192 = arith.divf %190, %191 : vector<2x32xf32>
    %193 = vector.extract_strided_slice %180 {offsets = [0, 64], sizes = [2, 32], strides = [1, 1]} : vector<2x128xf32> to vector<2x32xf32>
    %194 = math.tanh %193 : vector<2x32xf32>
    %195 = vector.extract_strided_slice %180 {offsets = [0, 96], sizes = [2, 32], strides = [1, 1]} : vector<2x128xf32> to vector<2x32xf32>
    %196 = arith.negf %195 : vector<2x32xf32>
    %197 = math.exp %196 : vector<2x32xf32>
    %cst_51 = arith.constant 1.000000e+00 : f32
    %198 = vector.broadcast %cst_51 : f32 to vector<2x32xf32>
    %199 = arith.addf %198, %197 : vector<2x32xf32>
    %200 = arith.divf %198, %199 : vector<2x32xf32>
    %201 = arith.mulf %192, %169 : vector<2x32xf32>
    %202 = arith.mulf %186, %194 : vector<2x32xf32>
    %203 = arith.addf %201, %202 : vector<2x32xf32>
    %204 = math.tanh %203 : vector<2x32xf32>
    %205 = arith.mulf %200, %204 : vector<2x32xf32>
    %206 = arith.index_cast %c5_i32 : i32 to index
    %c0_52 = arith.constant 0 : index
    %c0_53 = arith.constant 0 : index
    %207 = vector.load %arg4[%206, %c0_52, %c0_53] : memref<8x2x32xf32, #tpu.memory_space<vmem>>, vector<1x2x32xf32>
    %208 = vector.shape_cast %207 : vector<1x2x32xf32> to vector<2x32xf32>
    %209 = vector.shape_cast %205 : vector<2x32xf32> to vector<1x2x32xf32>
    tpu.vector_store %arg4[%206, %c0_52, %c0_53], %209 {strides = array<i32>} : memref<8x2x32xf32, #tpu.memory_space<vmem>>, vector<1x2x32xf32>,
    %c6_i32 = arith.constant 6 : i32
    %210 = arith.index_cast %c6_i32 : i32 to index
    %c0_54 = arith.constant 0 : index
    %c0_55 = arith.constant 0 : index
    %211 = vector.load %arg2[%210, %c0_54, %c0_55] : memref<8x2x128xf32, #tpu.memory_space<vmem>>, vector<1x2x128xf32>
    %212 = vector.shape_cast %211 : vector<1x2x128xf32> to vector<2x128xf32>
    %cst_56 = arith.constant dense<0.000000e+00> : vector<2x128xf32>
    %213 = tpu.matmul %205, %3, %cst_56 {dimension_numbers = #tpu.dot_dimension_numbers<[1], [0], [0], [1], [0, 0, 1, 1], [], []>} : vector<2x32xf32>, vector<32x128xf32>, vector<2x128xf32> -> vector<2x128xf32>
    %214 = arith.addf %212, %213 : vector<2x128xf32>
    %215 = vector.extract_strided_slice %214 {offsets = [0, 0], sizes = [2, 32], strides = [1, 1]} : vector<2x128xf32> to vector<2x32xf32>
    %216 = arith.negf %215 : vector<2x32xf32>
    %217 = math.exp %216 : vector<2x32xf32>
    %cst_57 = arith.constant 1.000000e+00 : f32
    %218 = vector.broadcast %cst_57 : f32 to vector<2x32xf32>
    %219 = arith.addf %218, %217 : vector<2x32xf32>
    %220 = arith.divf %218, %219 : vector<2x32xf32>
    %221 = vector.extract_strided_slice %214 {offsets = [0, 32], sizes = [2, 32], strides = [1, 1]} : vector<2x128xf32> to vector<2x32xf32>
    %222 = arith.negf %221 : vector<2x32xf32>
    %223 = math.exp %222 : vector<2x32xf32>
    %cst_58 = arith.constant 1.000000e+00 : f32
    %224 = vector.broadcast %cst_58 : f32 to vector<2x32xf32>
    %225 = arith.addf %224, %223 : vector<2x32xf32>
    %226 = arith.divf %224, %225 : vector<2x32xf32>
    %227 = vector.extract_strided_slice %214 {offsets = [0, 64], sizes = [2, 32], strides = [1, 1]} : vector<2x128xf32> to vector<2x32xf32>
    %228 = math.tanh %227 : vector<2x32xf32>
    %229 = vector.extract_strided_slice %214 {offsets = [0, 96], sizes = [2, 32], strides = [1, 1]} : vector<2x128xf32> to vector<2x32xf32>
    %230 = arith.negf %229 : vector<2x32xf32>
    %231 = math.exp %230 : vector<2x32xf32>
    %cst_59 = arith.constant 1.000000e+00 : f32
    %232 = vector.broadcast %cst_59 : f32 to vector<2x32xf32>
    %233 = arith.addf %232, %231 : vector<2x32xf32>
    %234 = arith.divf %232, %233 : vector<2x32xf32>
    %235 = arith.mulf %226, %203 : vector<2x32xf32>
    %236 = arith.mulf %220, %228 : vector<2x32xf32>
    %237 = arith.addf %235, %236 : vector<2x32xf32>
    %238 = math.tanh %237 : vector<2x32xf32>
    %239 = arith.mulf %234, %238 : vector<2x32xf32>
    %240 = arith.index_cast %c6_i32 : i32 to index
    %c0_60 = arith.constant 0 : index
    %c0_61 = arith.constant 0 : index
    %241 = vector.load %arg4[%240, %c0_60, %c0_61] : memref<8x2x32xf32, #tpu.memory_space<vmem>>, vector<1x2x32xf32>
    %242 = vector.shape_cast %241 : vector<1x2x32xf32> to vector<2x32xf32>
    %243 = vector.shape_cast %239 : vector<2x32xf32> to vector<1x2x32xf32>
    tpu.vector_store %arg4[%240, %c0_60, %c0_61], %243 {strides = array<i32>} : memref<8x2x32xf32, #tpu.memory_space<vmem>>, vector<1x2x32xf32>,
    %c7_i32 = arith.constant 7 : i32
    %244 = arith.index_cast %c7_i32 : i32 to index
    %c0_62 = arith.constant 0 : index
    %c0_63 = arith.constant 0 : index
    %245 = vector.load %arg2[%244, %c0_62, %c0_63] : memref<8x2x128xf32, #tpu.memory_space<vmem>>, vector<1x2x128xf32>
    %246 = vector.shape_cast %245 : vector<1x2x128xf32> to vector<2x128xf32>
    %cst_64 = arith.constant dense<0.000000e+00> : vector<2x128xf32>
    %247 = tpu.matmul %239, %3, %cst_64 {dimension_numbers = #tpu.dot_dimension_numbers<[1], [0], [0], [1], [0, 0, 1, 1], [], []>} : vector<2x32xf32>, vector<32x128xf32>, vector<2x128xf32> -> vector<2x128xf32>
    %248 = arith.addf %246, %247 : vector<2x128xf32>
    %249 = vector.extract_strided_slice %248 {offsets = [0, 0], sizes = [2, 32], strides = [1, 1]} : vector<2x128xf32> to vector<2x32xf32>
    %250 = arith.negf %249 : vector<2x32xf32>
    %251 = math.exp %250 : vector<2x32xf32>
    %cst_65 = arith.constant 1.000000e+00 : f32
    %252 = vector.broadcast %cst_65 : f32 to vector<2x32xf32>
    %253 = arith.addf %252, %251 : vector<2x32xf32>
    %254 = arith.divf %252, %253 : vector<2x32xf32>
    %255 = vector.extract_strided_slice %248 {offsets = [0, 32], sizes = [2, 32], strides = [1, 1]} : vector<2x128xf32> to vector<2x32xf32>
    %256 = arith.negf %255 : vector<2x32xf32>
    %257 = math.exp %256 : vector<2x32xf32>
    %cst_66 = arith.constant 1.000000e+00 : f32
    %258 = vector.broadcast %cst_66 : f32 to vector<2x32xf32>
    %259 = arith.addf %258, %257 : vector<2x32xf32>
    %260 = arith.divf %258, %259 : vector<2x32xf32>
    %261 = vector.extract_strided_slice %248 {offsets = [0, 64], sizes = [2, 32], strides = [1, 1]} : vector<2x128xf32> to vector<2x32xf32>
    %262 = math.tanh %261 : vector<2x32xf32>
    %263 = vector.extract_strided_slice %248 {offsets = [0, 96], sizes = [2, 32], strides = [1, 1]} : vector<2x128xf32> to vector<2x32xf32>
    %264 = arith.negf %263 : vector<2x32xf32>
    %265 = math.exp %264 : vector<2x32xf32>
    %cst_67 = arith.constant 1.000000e+00 : f32
    %266 = vector.broadcast %cst_67 : f32 to vector<2x32xf32>
    %267 = arith.addf %266, %265 : vector<2x32xf32>
    %268 = arith.divf %266, %267 : vector<2x32xf32>
    %269 = arith.mulf %260, %237 : vector<2x32xf32>
    %270 = arith.mulf %254, %262 : vector<2x32xf32>
    %271 = arith.addf %269, %270 : vector<2x32xf32>
    %272 = math.tanh %271 : vector<2x32xf32>
    %273 = arith.mulf %268, %272 : vector<2x32xf32>
    %274 = arith.index_cast %c7_i32 : i32 to index
    %c0_68 = arith.constant 0 : index
    %c0_69 = arith.constant 0 : index
    %275 = vector.load %arg4[%274, %c0_68, %c0_69] : memref<8x2x32xf32, #tpu.memory_space<vmem>>, vector<1x2x32xf32>
    %276 = vector.shape_cast %275 : vector<1x2x32xf32> to vector<2x32xf32>
    %277 = vector.shape_cast %273 : vector<2x32xf32> to vector<1x2x32xf32>
    tpu.vector_store %arg4[%274, %c0_68, %c0_69], %277 {strides = array<i32>} : memref<8x2x32xf32, #tpu.memory_space<vmem>>, vector<1x2x32xf32>,
    %c8_i32 = arith.constant 8 : i32
    %c0_70 = arith.constant 0 : index
    %c0_71 = arith.constant 0 : index
    %278 = vector.load %arg5[%c0_70, %c0_71] : memref<2x32xf32, #tpu.memory_space<vmem>>, vector<2x32xf32>
    tpu.vector_store %arg5[%c0_70, %c0_71], %273 {strides = array<i32>} : memref<2x32xf32, #tpu.memory_space<vmem>>, vector<2x32xf32>,
    %c0_72 = arith.constant 0 : index
    %c0_73 = arith.constant 0 : index
    %279 = vector.load %arg6[%c0_72, %c0_73] : memref<2x32xf32, #tpu.memory_space<vmem>>, vector<2x32xf32>
    tpu.vector_store %arg6[%c0_72, %c0_73], %271 {strides = array<i32>} : memref<2x32xf32, #tpu.memory_space<vmem>>, vector<2x32xf32>,
    return
  }
  func.func @transform_0(%arg0: i32, %arg1: i32) -> (i32, i32, i32) {
    %c0_i32 = arith.constant 0 : i32
    %c0_i32_0 = arith.constant 0 : i32
    return %arg1, %arg0, %c0_i32 : i32, i32, i32
  }
  func.func @transform_1(%arg0: i32, %arg1: i32) -> (i32, i32) {
    %c0_i32 = arith.constant 0 : i32
    %c0_i32_0 = arith.constant 0 : i32
    %c0_i32_1 = arith.constant 0 : i32
    return %c0_i32, %c0_i32_0 : i32, i32
  }
  func.func @transform_2(%arg0: i32, %arg1: i32) -> (i32, i32, i32) {
    %c0_i32 = arith.constant 0 : i32
    %c0_i32_0 = arith.constant 0 : i32
    return %arg1, %arg0, %c0_i32 : i32, i32, i32
  }
}

</mosaic_0001>

<bundles_post_ra>
// kernel: tpu_custom_call.1
= control target key start
LH: loop header
LB: loop body
LE: loop exit
PB: predicated region body
PF: predicated region fallthrough
CT: control target
= control target key end

     0   :  { %7 = vsyncpa [#allocation5], 0  ;;  %s1438_s0 = inlined_call_operand.hbm [shape: f32[8,2,128], index: 0, kind: input, shape index: {}]   ;;  %s1439_s1 = inlined_call_operand.hbm [shape: f32[32,128], index: 1, kind: input, shape index: {}]   ;;  %s1440_s2 = inlined_call_operand.hbm [shape: f32[8,2,32], index: 2, kind: output, shape index: {}]  }
   0x1   :  { %8 = vsyncpa [#allocation8], 0 }
   0x2   :  { %9 = vsyncpa [#allocation6], 0  ;;  %s1262_s9 = smov [#allocation4]   ;;  %s1190_s13 = scalar_lea.hbm %s1438_s0, 256 }
   0x3   :  { %s15_s10 = sshll.u32 %s1262_s9, 4  ;;  %p1191_p0 = scmp.ne.s32.totalorder %s1438_s0, %s1190_s13  ;;  %s16_s10 = int_to_ptr.vmem [resolvable:$true] %s15_s10 }
   0x4   :  { %p1194_p1 = scmp.lt.u32.totalorder %s1190_s13, %s1438_s0 }
   0x6   :  { %p1196_p2 = pnand %p1194_p1, %p1191_p0 }
   0x8   :  { %1199 = shalt.err (!%p1196_p2)
}
   0x9   :  { %s1200_s18 = scalar_lea.vmem %s16_s10, 256  ;;  %p1205_p4 = scmp.lt.s32.totalorder %s16_s10, %s16_s10 }
   0xa   :  { %p1201_p3 = scmp.ne.s32.totalorder %s16_s10, %s1200_s18  ;;  %p1206_p5 = scmp.lt.s32.totalorder %s1200_s18, %s1200_s18 }
   0xc   :  { %p1207_p6 = por %p1206_p5, %p1205_p4 }
   0xe   :  { %p1208_p7 = pnand %p1207_p6, %p1201_p3 }
  0x10   :  { %1211 = shalt.err (!%p1208_p7)
}
  0x11   :  { %s1263_s19 = smov 32   ;;  %s1264_s20 = smov 2  }
  0x12   :  { %21 = dma.hbm_to_vmem [thread:$0]  %s1438_s0, 256, %s16_s10, [#allocation5], %s1263_s19, %s1263_s19, %s1264_s20  }
  0x13   :  { %s1265_s23 = smov [#allocation7]   ;;  %s1212_s27 = scalar_lea.hbm %s1439_s1, 512 }
  0x14   :  { %s27_s24 = sshll.u32 %s1265_s23, 4  ;;  %p1213_p8 = scmp.ne.s32.totalorder %s1439_s1, %s1212_s27  ;;  %s28_s24 = int_to_ptr.vmem [resolvable:$true] %s27_s24 }
  0x15   :  { %p1216_p9 = scmp.lt.u32.totalorder %s1212_s27, %s1439_s1 }
  0x17   :  { %p1218_p10 = pnand %p1216_p9, %p1213_p8 }
  0x19   :  { %1221 = shalt.err (!%p1218_p10)
}
  0x1a   :  { %s1222_s4 = scalar_lea.vmem %s28_s24, 512  ;;  %p1227_p12 = scmp.lt.s32.totalorder %s28_s24, %s28_s24 }
  0x1b   :  { %p1223_p11 = scmp.ne.s32.totalorder %s28_s24, %s1222_s4  ;;  %p1228_p13 = scmp.lt.s32.totalorder %s1222_s4, %s1222_s4 }
  0x1d   :  { %p1229_p0 = por %p1228_p13, %p1227_p12 }
  0x1f   :  { %p1230_p1 = pnand %p1229_p0, %p1223_p11 }
  0x21   :  { %1233 = shalt.err (!%p1230_p1)
}
  0x22   :  { %s1266_s0 = smov 128   ;;  %s1267_s5 = smov 8  }
  0x23   :  { %33 = dma.hbm_to_vmem [thread:$0]  %s1439_s1, 512, %s28_s24, [#allocation8], %s1266_s0, %s1266_s0, %s1267_s5  }
  0x24   :  { %1256 = dma.done.wait [#allocation5], 256  }
  0x25   :  { %1257 = vsyncadd [#allocation5], 4294967040 }
  0x26   :  { %1258 = dma.done.wait [#allocation8], 512  }
  0x27   :  { %1259 = vsyncadd [#allocation8], 4294966784  ;;  %vm44_vm0 = vcmask 254976   ;;  %v1268_v0 = vmov 0.0|0.0   ;;  %vm1269_vm1 = vmmov 0   ;;  %v1270_v1 = vmov 0.0  }
  0x28   :  { %1066 = vmatprep.subr.bf16.mxu0 %v1268_v0  ;;  %986 = vmatprep.mubr.msk.f32.mxu0 %vm1269_vm1, %v1270_v1  ;;  %45 = vst.msk [vmem:[#allocation2] sm:$0x3] %vm44_vm0, %v1270_v1  ;;  %46 = vst.msk [vmem:[#allocation3] sm:$0x3] %vm44_vm0, %v1270_v1  ;;  %v47_v2 = vld [vmem:[#allocation7] sm:$0xff]  ;;  %v48_v3 = vld [vmem:[#allocation7 + $0x8] sm:$0xff] }
  0x29   :  { %1072 = vmatprep.subr.bf16.mxu1 %v1268_v0  ;;  %997 = vmatprep.mubr.msk.f32.mxu1 %vm1269_vm1, %v1270_v1  ;;  %v49_v4 = vld [vmem:[#allocation7 + $0x10] sm:$0xff]  ;;  %v1326_v5 = vpack.c.bf16 %v48_v3, %v47_v2  ;;  %v50_v6 = vld [vmem:[#allocation7 + $0x18] sm:$0xff]  ;;  %vm54_vm2 = vcmask 261120   ;;  %s1271_s1 = smov 64   ;;  %s1272_s8 = smov 96  }
  0x2a   :  { %v1329_v7 = vpack.c.bf16 %v50_v6, %v49_v4  ;;  %v53_v9 = vld [vmem:[#allocation4] sm:$0x3]  ;;  %v164_v29 = vld [vmem:[#allocation4 + $0x2] sm:$0x3]  ;;  %v269_v47 = vld [vmem:[#allocation4 + $0x4] sm:$0x3] }
  0x2b   :  { %1068 = vmatpush3.bf16.msra.mxu0 %v1326_v5  ;;  %1074 = vmatpush3.bf16.msra.mxu1 %v1326_v5  ;;  %v374_v3 = vld [vmem:[#allocation4 + $0x6] sm:$0x3]  ;;  %s1273_s9 = smov [#allocation9]  }
  0x2c   :  { %1069 = vmatprep.subr.bf16.mxu0 %v1268_v0  ;;  %1075 = vmatprep.subr.bf16.mxu1 %v1268_v0  ;;  %s909_s10 = sshll.u32 %s1273_s9, 4  ;;  %s910_s10 = int_to_ptr.vmem [resolvable:$true] %s909_s10 }
  0x2d   :  { %s1234_s11 = scalar_lea.vmem %s910_s10, 256  ;;  %p1239_p3 = scmp.lt.s32.totalorder %s910_s10, %s910_s10 }
  0x2e   :  { %p1235_p2 = scmp.ne.s32.totalorder %s910_s10, %s1234_s11  ;;  %p1240_p4 = scmp.lt.s32.totalorder %s1234_s11, %s1234_s11 }
  0x2f   :  { %1071 = vmatpush3.bf16.msra.mxu0 %v1329_v7  ;;  %v51_v8 = vld [vmem:[#allocation2] sm:$0x3]  ;;  %1077 = vmatpush3.bf16.msra.mxu1 %v1329_v7  ;;  %v52_v14 = vld [vmem:[#allocation3] sm:$0x3] }
  0x30   :  { %1078 = vmatprep.subr.bf16.mxu0 %v1268_v0  ;;  %1084 = vmatprep.subr.bf16.mxu1 %v1268_v0  ;;  %p1241_p5 = por %p1240_p4, %p1239_p3 }
  0x32   :  { %987 = vmatmul.mubr.msk.f32.vlgmr.msra.gmra.mrb[0].mxu0 %vm54_vm2, %v51_v8  ;;  %p1242_p6 = pnand %p1241_p5, %p1235_p2 }
  0x33   :  { %1080 = vmatpush3.bf16.msra.mxu0 %v1326_v5  ;;  %1008 = vmatprep.mubr.msk.f32.mxu0 %vm1269_vm1, %v1270_v1 }
  0x34   :  { %1081 = vmatprep.subr.bf16.mxu0 %v1268_v0 }
  0x37   :  { %1083 = vmatpush3.bf16.msra.mxu0 %v1329_v7 }
  0x38   :  { %1090 = vmatprep.subr.bf16.mxu0 %v1268_v0 }
 0x105   :  { %v124_v10 = vpop.f32.mrb[0].mxu0 }
 0x106   :  { %v128_v11 = vadd.f32 %v124_v10, %v53_v9  ;;  %v988_v12 = vpop.f32.mrb[1].mxu0 }
 0x108   :  { %1126 = vtanh.f32 %v128_v11  ;;  %v923_v15 = vmul.f32 -1.442695, %v128_v11 }
 0x10a   :  { %1128 = vpow2.f32 %v923_v15 }
 0x112   :  { %v1127_v13 = vpop.eup %1126 }
 0x113   :  { %142 = vrot.lane.b32.xlu0 %v1127_v13, %s1271_s1 }
 0x114   :  { %v1129_v16 = vpop.eup %1128 }
 0x115   :  { %v132_v17 = vadd.f32 1.0, %v1129_v16 }
 0x117   :  { %137 = vrot.lane.b32.xlu0 %v52_v14, %s1263_s19  ;;  %1130 = vrcp.f32 %v132_v17 }
 0x121   :  { %v1131_v18 = vpop.eup %1130 }
 0x185   :  { %v143_v19 = vpop.permute.xlu0 %142 }
 0x186   :  { %v145_v20 = vmul.f32 %v1131_v18, %v143_v19 }
 0x188   :  { %147 = vrot.lane.b32.xlu1 %v145_v20, %s1263_s19 }
 0x189   :  { %v138_v21 = vpop.permute.xlu0 %137 }
 0x18a   :  { %v140_v22 = vmul.f32 %v1131_v18, %v138_v21 }
 0x1fa   :  { %v148_v23 = vpop.permute.xlu1 %147 }
 0x1fb   :  { %v150_v24 = vadd.f32 %v148_v23, %v140_v22  ;;  %v479_v23 = vld [vmem:[#allocation4 + $0x8] sm:$0x3] }
 0x1fd   :  { %1132 = vtanh.f32 %v150_v24 }
 0x207   :  { %v1133_v25 = vpop.eup %1132 }
 0x208   :  { %153 = vrot.lane.b32.xlu1 %v1133_v25, %s1271_s1 }
 0x27a   :  { %v154_v26 = vpop.permute.xlu1 %153 }
 0x27b   :  { %v156_v27 = vmul.f32 %v1131_v18, %v154_v26 }
 0x27d   :  { %158 = vrot.lane.b32.xlu0 %v156_v27, %s1263_s19 }
 0x2ef   :  { %v159_v28 = vpop.permute.xlu0 %158 }
 0x2f0   :  { %162 = vst.msk [vmem:[#allocation9] sm:$0x3] %vm44_vm0, %v159_v28  ;;  %998 = vmatmul.mubr.msk.f32.vlgmr.msra.gmra.mrb[0].mxu1 %vm54_vm2, %v159_v28 }
 0x2f1   :  { %1086 = vmatpush3.bf16.msra.mxu1 %v1326_v5  ;;  %1019 = vmatprep.mubr.msk.f32.mxu1 %vm1269_vm1, %v1270_v1 }
 0x2f2   :  { %1087 = vmatprep.subr.bf16.mxu1 %v1268_v0 }
 0x2f5   :  { %1089 = vmatpush3.bf16.msra.mxu1 %v1329_v7 }
 0x2f6   :  { %1096 = vmatprep.subr.bf16.mxu1 %v1268_v0 }
 0x3c3   :  { %v233_v30 = vpop.f32.mrb[0].mxu1 }
 0x3c4   :  { %v237_v31 = vadd.f32 %v233_v30, %v164_v29  ;;  %v999_v32 = vpop.f32.mrb[1].mxu1 }
 0x3c6   :  { %1134 = vtanh.f32 %v237_v31  ;;  %v925_v34 = vmul.f32 -1.442695, %v237_v31 }
 0x3c8   :  { %1136 = vpow2.f32 %v925_v34 }
 0x3d0   :  { %v1135_v33 = vpop.eup %1134 }
 0x3d1   :  { %247 = vrot.lane.b32.xlu1 %v1135_v33, %s1271_s1 }
 0x3d2   :  { %v1137_v35 = vpop.eup %1136 }
 0x3d3   :  { %v241_v36 = vadd.f32 1.0, %v1137_v35 }
 0x3d5   :  { %1138 = vrcp.f32 %v241_v36 }
 0x3df   :  { %v1139_v37 = vpop.eup %1138 }
 0x3e0   :  { %v245_v40 = vmul.f32 %v1139_v37, %v150_v24 }
 0x443   :  { %v248_v38 = vpop.permute.xlu1 %247 }
 0x444   :  { %v250_v39 = vmul.f32 %v1139_v37, %v248_v38 }
 0x446   :  { %252 = vrot.lane.b32.xlu0 %v250_v39, %s1263_s19 }
 0x4b8   :  { %v253_v41 = vpop.permute.xlu0 %252 }
 0x4b9   :  { %v255_v42 = vadd.f32 %v253_v41, %v245_v40  ;;  %v584_v41 = vld [vmem:[#allocation4 + $0xa] sm:$0x3] }
 0x4bb   :  { %1140 = vtanh.f32 %v255_v42 }
 0x4c5   :  { %v1141_v43 = vpop.eup %1140 }
 0x4c6   :  { %258 = vrot.lane.b32.xlu1 %v1141_v43, %s1271_s1 }
 0x538   :  { %v259_v44 = vpop.permute.xlu1 %258 }
 0x539   :  { %v261_v45 = vmul.f32 %v1139_v37, %v259_v44 }
 0x53b   :  { %263 = vrot.lane.b32.xlu0 %v261_v45, %s1263_s19 }
 0x5ad   :  { %v264_v46 = vpop.permute.xlu0 %263 }
 0x5ae   :  { %267 = vst.msk [vmem:[#allocation9 + $0x2] sm:$0x3] %vm44_vm0, %v264_v46  ;;  %1009 = vmatmul.mubr.msk.f32.vlgmr.msra.gmra.mrb[2].mxu0 %vm54_vm2, %v264_v46 }
 0x5af   :  { %1092 = vmatpush3.bf16.msra.mxu0 %v1326_v5  ;;  %1030 = vmatprep.mubr.msk.f32.mxu0 %vm1269_vm1, %v1270_v1 }
 0x5b0   :  { %1093 = vmatprep.subr.bf16.mxu0 %v1268_v0 }
 0x5b3   :  { %1095 = vmatpush3.bf16.msra.mxu0 %v1329_v7 }
 0x5b4   :  { %1102 = vmatprep.subr.bf16.mxu0 %v1268_v0 }
 0x681   :  { %v338_v48 = vpop.f32.mrb[2].mxu0 }
 0x682   :  { %v342_v49 = vadd.f32 %v338_v48, %v269_v47  ;;  %v1010_v50 = vpop.f32.mrb[3].mxu0 }
 0x684   :  { %1142 = vtanh.f32 %v342_v49  ;;  %v927_v52 = vmul.f32 -1.442695, %v342_v49 }
 0x686   :  { %1144 = vpow2.f32 %v927_v52 }
 0x68e   :  { %v1143_v51 = vpop.eup %1142 }
 0x68f   :  { %352 = vrot.lane.b32.xlu1 %v1143_v51, %s1271_s1 }
 0x690   :  { %v1145_v53 = vpop.eup %1144 }
 0x691   :  { %v346_v54 = vadd.f32 1.0, %v1145_v53 }
 0x693   :  { %1146 = vrcp.f32 %v346_v54 }
 0x69d   :  { %v1147_v55 = vpop.eup %1146 }
 0x69e   :  { %v350_v58 = vmul.f32 %v1147_v55, %v255_v42 }
 0x701   :  { %v353_v56 = vpop.permute.xlu1 %352 }
 0x702   :  { %v355_v57 = vmul.f32 %v1147_v55, %v353_v56 }
 0x704   :  { %357 = vrot.lane.b32.xlu0 %v355_v57, %s1263_s19 }
 0x776   :  { %v358_v59 = vpop.permute.xlu0 %357 }
 0x777   :  { %v360_v60 = vadd.f32 %v358_v59, %v350_v58 }
 0x779   :  { %1148 = vtanh.f32 %v360_v60 }
 0x783   :  { %v1149_v61 = vpop.eup %1148 }
 0x784   :  { %363 = vrot.lane.b32.xlu1 %v1149_v61, %s1271_s1 }
 0x7f6   :  { %v364_v62 = vpop.permute.xlu1 %363 }
 0x7f7   :  { %v366_v63 = vmul.f32 %v1147_v55, %v364_v62  ;;  %v689_v55 = vld [vmem:[#allocation4 + $0xc] sm:$0x3] }
 0x7f9   :  { %368 = vrot.lane.b32.xlu0 %v366_v63, %s1263_s19 }
 0x86b   :  { %v369_v2 = vpop.permute.xlu0 %368 }
 0x86c   :  { %372 = vst.msk [vmem:[#allocation9 + $0x4] sm:$0x3] %vm44_vm0, %v369_v2  ;;  %1020 = vmatmul.mubr.msk.f32.vlgmr.msra.gmra.mrb[2].mxu1 %vm54_vm2, %v369_v2 }
 0x86d   :  { %1098 = vmatpush3.bf16.msra.mxu1 %v1326_v5  ;;  %1041 = vmatprep.mubr.msk.f32.mxu1 %vm1269_vm1, %v1270_v1 }
 0x86e   :  { %1099 = vmatprep.subr.bf16.mxu1 %v1268_v0 }
 0x871   :  { %1101 = vmatpush3.bf16.msra.mxu1 %v1329_v7 }
 0x872   :  { %1108 = vmatprep.subr.bf16.mxu1 %v1268_v0 }
 0x93f   :  { %v443_v4 = vpop.f32.mrb[2].mxu1 }
 0x940   :  { %v447_v6 = vadd.f32 %v443_v4, %v374_v3  ;;  %v1021_v8 = vpop.f32.mrb[3].mxu1 }
 0x942   :  { %1150 = vtanh.f32 %v447_v6  ;;  %v929_v10 = vmul.f32 -1.442695, %v447_v6 }
 0x944   :  { %1152 = vpow2.f32 %v929_v10 }
 0x94c   :  { %v1151_v9 = vpop.eup %1150 }
 0x94d   :  { %457 = vrot.lane.b32.xlu1 %v1151_v9, %s1271_s1 }
 0x94e   :  { %v1153_v11 = vpop.eup %1152 }
 0x94f   :  { %v451_v12 = vadd.f32 1.0, %v1153_v11 }
 0x951   :  { %1154 = vrcp.f32 %v451_v12 }
 0x95b   :  { %v1155_v13 = vpop.eup %1154 }
 0x95c   :  { %v455_v16 = vmul.f32 %v1155_v13, %v360_v60 }
 0x9bf   :  { %v458_v14 = vpop.permute.xlu1 %457 }
 0x9c0   :  { %v460_v15 = vmul.f32 %v1155_v13, %v458_v14 }
 0x9c2   :  { %462 = vrot.lane.b32.xlu0 %v460_v15, %s1263_s19 }
 0xa34   :  { %v463_v17 = vpop.permute.xlu0 %462 }
 0xa35   :  { %v465_v18 = vadd.f32 %v463_v17, %v455_v16 }
 0xa37   :  { %1156 = vtanh.f32 %v465_v18 }
 0xa41   :  { %v1157_v19 = vpop.eup %1156 }
 0xa42   :  { %468 = vrot.lane.b32.xlu1 %v1157_v19, %s1271_s1 }
 0xab4   :  { %v469_v20 = vpop.permute.xlu1 %468 }
 0xab5   :  { %v471_v21 = vmul.f32 %v1155_v13, %v469_v20  ;;  %v794_v13 = vld [vmem:[#allocation4 + $0xe] sm:$0x3] }
 0xab7   :  { %473 = vrot.lane.b32.xlu0 %v471_v21, %s1263_s19 }
 0xb29   :  { %v474_v22 = vpop.permute.xlu0 %473 }
 0xb2a   :  { %477 = vst.msk [vmem:[#allocation9 + $0x6] sm:$0x3] %vm44_vm0, %v474_v22  ;;  %1031 = vmatmul.mubr.msk.f32.vlgmr.msra.gmra.mrb[4].mxu0 %vm54_vm2, %v474_v22 }
 0xb2b   :  { %1104 = vmatpush3.bf16.msra.mxu0 %v1326_v5  ;;  %1052 = vmatprep.mubr.msk.f32.mxu0 %vm1269_vm1, %v1270_v1 }
 0xb2c   :  { %1105 = vmatprep.subr.bf16.mxu0 %v1268_v0 }
 0xb2f   :  { %1107 = vmatpush3.bf16.msra.mxu0 %v1329_v7 }
 0xbfd   :  { %v548_v24 = vpop.f32.mrb[4].mxu0 }
 0xbfe   :  { %v552_v25 = vadd.f32 %v548_v24, %v479_v23  ;;  %v1032_v26 = vpop.f32.mrb[5].mxu0 }
 0xc00   :  { %1158 = vtanh.f32 %v552_v25  ;;  %v931_v28 = vmul.f32 -1.442695, %v552_v25 }
 0xc02   :  { %1160 = vpow2.f32 %v931_v28 }
 0xc0a   :  { %v1159_v27 = vpop.eup %1158 }
 0xc0b   :  { %562 = vrot.lane.b32.xlu1 %v1159_v27, %s1271_s1 }
 0xc0c   :  { %v1161_v29 = vpop.eup %1160 }
 0xc0d   :  { %v556_v30 = vadd.f32 1.0, %v1161_v29 }
 0xc0f   :  { %1162 = vrcp.f32 %v556_v30 }
 0xc19   :  { %v1163_v31 = vpop.eup %1162 }
 0xc1a   :  { %v560_v34 = vmul.f32 %v1163_v31, %v465_v18 }
 0xc7d   :  { %v563_v32 = vpop.permute.xlu1 %562 }
 0xc7e   :  { %v565_v33 = vmul.f32 %v1163_v31, %v563_v32 }
 0xc80   :  { %567 = vrot.lane.b32.xlu0 %v565_v33, %s1263_s19 }
 0xcf2   :  { %v568_v35 = vpop.permute.xlu0 %567 }
 0xcf3   :  { %v570_v36 = vadd.f32 %v568_v35, %v560_v34 }
 0xcf5   :  { %1164 = vtanh.f32 %v570_v36 }
 0xcff   :  { %v1165_v37 = vpop.eup %1164 }
 0xd00   :  { %573 = vrot.lane.b32.xlu1 %v1165_v37, %s1271_s1 }
 0xd72   :  { %v574_v38 = vpop.permute.xlu1 %573 }
 0xd73   :  { %v576_v39 = vmul.f32 %v1163_v31, %v574_v38 }
 0xd75   :  { %578 = vrot.lane.b32.xlu0 %v576_v39, %s1263_s19 }
 0xde7   :  { %v579_v40 = vpop.permute.xlu0 %578 }
 0xde8   :  { %582 = vst.msk [vmem:[#allocation9 + $0x8] sm:$0x3] %vm44_vm0, %v579_v40  ;;  %1042 = vmatmul.mubr.msk.f32.vlgmr.msra.gmra.mrb[4].mxu1 %vm54_vm2, %v579_v40 }
 0xde9   :  { %1110 = vmatpush3.bf16.msra.mxu1 %v1326_v5  ;;  %1063 = vmatprep.mubr.msk.f32.mxu1 %vm1269_vm1, %v1270_v1 }
 0xdea   :  { %1111 = vmatprep.subr.bf16.mxu1 %v1268_v0 }
 0xded   :  { %1113 = vmatpush3.bf16.msra.mxu1 %v1329_v7 }
 0xebb   :  { %v653_v42 = vpop.f32.mrb[4].mxu1 }
 0xebc   :  { %v657_v43 = vadd.f32 %v653_v42, %v584_v41  ;;  %v1043_v44 = vpop.f32.mrb[5].mxu1 }
 0xebe   :  { %1166 = vtanh.f32 %v657_v43  ;;  %v933_v46 = vmul.f32 -1.442695, %v657_v43 }
 0xec0   :  { %1168 = vpow2.f32 %v933_v46 }
 0xec8   :  { %v1167_v45 = vpop.eup %1166 }
 0xec9   :  { %667 = vrot.lane.b32.xlu1 %v1167_v45, %s1271_s1 }
 0xeca   :  { %v1169_v47 = vpop.eup %1168 }
 0xecb   :  { %v661_v48 = vadd.f32 1.0, %v1169_v47 }
 0xecd   :  { %1170 = vrcp.f32 %v661_v48 }
 0xed7   :  { %v1171_v5 = vpop.eup %1170 }
 0xed8   :  { %v665_v0 = vmul.f32 %v1171_v5, %v570_v36 }
 0xf3b   :  { %v668_v49 = vpop.permute.xlu1 %667 }
 0xf3c   :  { %v670_v1 = vmul.f32 %v1171_v5, %v668_v49 }
 0xf3e   :  { %672 = vrot.lane.b32.xlu0 %v670_v1, %s1263_s19 }
 0xfb0   :  { %v673_v7 = vpop.permute.xlu0 %672 }
 0xfb1   :  { %v675_v50 = vadd.f32 %v673_v7, %v665_v0 }
 0xfb3   :  { %1172 = vtanh.f32 %v675_v50 }
 0xfbd   :  { %v1173_v51 = vpop.eup %1172 }
 0xfbe   :  { %678 = vrot.lane.b32.xlu1 %v1173_v51, %s1271_s1 }
0x1030   :  { %v679_v52 = vpop.permute.xlu1 %678 }
0x1031   :  { %v681_v53 = vmul.f32 %v1171_v5, %v679_v52 }
0x1033   :  { %683 = vrot.lane.b32.xlu0 %v681_v53, %s1263_s19 }
0x10a5   :  { %v684_v54 = vpop.permute.xlu0 %683 }
0x10a6   :  { %687 = vst.msk [vmem:[#allocation9 + $0xa] sm:$0x3] %vm44_vm0, %v684_v54  ;;  %1053 = vmatmul.mubr.msk.f32.vlgmr.msra.gmra.mrb[6].mxu0 %vm54_vm2, %v684_v54 }
0x1179   :  { %v758_v56 = vpop.f32.mrb[6].mxu0 }
0x117a   :  { %v762_v57 = vadd.f32 %v758_v56, %v689_v55  ;;  %v1054_v58 = vpop.f32.mrb[7].mxu0 }
0x117c   :  { %1174 = vtanh.f32 %v762_v57  ;;  %v935_v60 = vmul.f32 -1.442695, %v762_v57 }
0x117e   :  { %1176 = vpow2.f32 %v935_v60 }
0x1186   :  { %v1175_v59 = vpop.eup %1174 }
0x1187   :  { %772 = vrot.lane.b32.xlu1 %v1175_v59, %s1271_s1 }
0x1188   :  { %v1177_v61 = vpop.eup %1176 }
0x1189   :  { %v766_v62 = vadd.f32 1.0, %v1177_v61 }
0x118b   :  { %1178 = vrcp.f32 %v766_v62 }
0x1195   :  { %v1179_v63 = vpop.eup %1178 }
0x1196   :  { %v770_v4 = vmul.f32 %v1179_v63, %v675_v50 }
0x11f9   :  { %v773_v2 = vpop.permute.xlu1 %772 }
0x11fa   :  { %v775_v3 = vmul.f32 %v1179_v63, %v773_v2 }
0x11fc   :  { %777 = vrot.lane.b32.xlu0 %v775_v3, %s1263_s19 }
0x126e   :  { %v778_v6 = vpop.permute.xlu0 %777 }
0x126f   :  { %v780_v8 = vadd.f32 %v778_v6, %v770_v4 }
0x1271   :  { %1180 = vtanh.f32 %v780_v8 }
0x127b   :  { %v1181_v9 = vpop.eup %1180 }
0x127c   :  { %783 = vrot.lane.b32.xlu1 %v1181_v9, %s1271_s1 }
0x12ee   :  { %v784_v10 = vpop.permute.xlu1 %783 }
0x12ef   :  { %v786_v11 = vmul.f32 %v1179_v63, %v784_v10 }
0x12f1   :  { %788 = vrot.lane.b32.xlu0 %v786_v11, %s1263_s19 }
0x1363   :  { %v789_v12 = vpop.permute.xlu0 %788 }
0x1364   :  { %792 = vst.msk [vmem:[#allocation9 + $0xc] sm:$0x3] %vm44_vm0, %v789_v12  ;;  %1064 = vmatmul.mubr.msk.f32.vlgmr.msra.gmra.mrb[6].mxu1 %vm54_vm2, %v789_v12 }
0x1437   :  { %v863_v14 = vpop.f32.mrb[6].mxu1 }
0x1438   :  { %v867_v15 = vadd.f32 %v863_v14, %v794_v13  ;;  %v1065_v16 = vpop.f32.mrb[7].mxu1 }
0x143a   :  { %1182 = vtanh.f32 %v867_v15  ;;  %v937_v18 = vmul.f32 -1.442695, %v867_v15 }
0x143c   :  { %1184 = vpow2.f32 %v937_v18 }
0x1444   :  { %v1183_v17 = vpop.eup %1182 }
0x1445   :  { %877 = vrot.lane.b32.xlu1 %v1183_v17, %s1271_s1 }
0x1446   :  { %v1185_v19 = vpop.eup %1184 }
0x1447   :  { %v871_v20 = vadd.f32 1.0, %v1185_v19 }
0x1449   :  { %1186 = vrcp.f32 %v871_v20 }
0x1453   :  { %v1187_v21 = vpop.eup %1186 }
0x1454   :  { %v875_v24 = vmul.f32 %v1187_v21, %v780_v8 }
0x14b7   :  { %v878_v22 = vpop.permute.xlu1 %877 }
0x14b8   :  { %v880_v23 = vmul.f32 %v1187_v21, %v878_v22 }
0x14ba   :  { %882 = vrot.lane.b32.xlu0 %v880_v23, %s1263_s19 }
0x152c   :  { %v883_v25 = vpop.permute.xlu0 %882 }
0x152d   :  { %v885_v26 = vadd.f32 %v883_v25, %v875_v24 }
0x152f   :  { %1188 = vtanh.f32 %v885_v26 }
0x1539   :  { %v1189_v27 = vpop.eup %1188 }
0x153a   :  { %888 = vrot.lane.b32.xlu1 %v1189_v27, %s1271_s1 }
0x153e   :  { %900 = vrot.lane.b32.xlu1 %v885_v26, %s1272_s8 }
0x15ac   :  { %v889_v28 = vpop.permute.xlu1 %888 }
0x15ad   :  { %v891_v29 = vmul.f32 %v1187_v21, %v889_v28 }
0x15af   :  { %893 = vrot.lane.b32.xlu0 %v891_v29, %s1263_s19 }
0x15b0   :  { %v901_v30 = vpop.permute.xlu1 %900 }
0x15b1   :  { %903 = vst.msk [vmem:[#allocation3] sm:$0x3] %vm44_vm0, %v901_v30 }
0x1621   :  { %v894_v31 = vpop.permute.xlu0 %893 }
0x1622   :  { %897 = vst.msk [vmem:[#allocation9 + $0xe] sm:$0x3] %vm44_vm0, %v894_v31  ;;  %898 = vst.msk [vmem:[#allocation2] sm:$0x3] %vm44_vm0, %v894_v31 }
0x1623   :  { %1245 = shalt.err (!%p1242_p6)
}
0x1624   :  { %s1246_s14 = scalar_lea.hbm %s1440_s2, 256 }
0x1625   :  { %p1247_p7 = scmp.ne.s32.totalorder %s1440_s2, %s1246_s14  ;;  %p1250_p8 = scmp.lt.u32.totalorder %s1246_s14, %s1440_s2 }
0x1627   :  { %p1252_p9 = pnand %p1250_p8, %p1247_p7 }
0x1629   :  { %1255 = shalt.err (!%p1252_p9)
}
0x162a   :  { %915 = dma.vmem_to_hbm [thread:$0]  %s910_s10, 256, %s1440_s2, [#allocation6], %s1263_s19, %s1263_s19, %s1264_s20  }
0x162b   :  { %1260 = dma.done.wait [#allocation6], 256  }
0x162c   :  { %1261 = vsyncadd [#allocation6], 4294967040 }
0x162d   :  { %919 = vsyncpa [#allocation5], 1 }
0x162e   :  { %920 = vsyncpa [#allocation8], 1 }
0x162f   :  { %921 = vsyncpa [#allocation6], 1 }

</bundles_post_ra>
